<compile_context>
chip_gen: v7x
topology: tpu7x:2x2x1
jax: 0.10.0
libtpu: 0.0.40
codegen_flags: <defaults>
</compile_context>

<pallas_src>
import functools

import jax
import jax.numpy as jnp
import numpy as np
from jax import lax
from jax.experimental import pallas as pl
from jax.experimental.pallas import tpu as pltpu

_LANE = 128
_SUBLANE = 8


def _round_up(x, m):
    return ((x + m - 1) // m) * m


def _vmem_limit_bytes():
    # ~75% of physical VMEM: ~96 MiB on v5e/v6e (128 MiB), ~48 MiB on v7x (64 MiB).
    try:
        return int(0.75 * pltpu.get_tpu_info().vmem_capacity_bytes)
    except Exception:
        return 48 * 1024 * 1024


def _maybe_single_buffered(block_shape, index_map):
    """Constant-index blocks don't need double buffering; halves their VMEM footprint."""
    try:
        return pl.BlockSpec(block_shape, index_map, pipeline_mode=pl.Buffered(1))
    except (TypeError, AttributeError):
        return pl.BlockSpec(block_shape, index_map)


# -----------------------------------------------------------------------------
# Kernel 1: proj = emb_table @ fc_weight.T, tiled over vocab rows (MXU matmul).
# -----------------------------------------------------------------------------
def _project_kernel(emb_ref, wt_ref, out_ref):
    out_ref[...] = jnp.dot(emb_ref[...], wt_ref[...],
                           preferred_element_type=jnp.float32)


def _project_table(emb_table, wt_p, tile_v, vmem_limit):
    vocab, embed_dim = emb_table.shape
    _, c_pad = wt_p.shape
    grid_spec = pltpu.PrefetchScalarGridSpec(
        num_scalar_prefetch=0,
        grid=(pl.cdiv(vocab, tile_v),),
        in_specs=[
            # embed_dim equals the full array dim -> exempt from the 128-lane rule,
            # so the raw (unpadded) table is consumed directly; no host-side copy.
            pl.BlockSpec((tile_v, embed_dim), lambda i: (i, 0)),
            _maybe_single_buffered((embed_dim, c_pad), lambda i: (0, 0)),
        ],
        out_specs=pl.BlockSpec((tile_v, c_pad), lambda i: (i, 0)),
    )
    return pl.pallas_call(
        _project_kernel,
        out_shape=jax.ShapeDtypeStruct((vocab, c_pad), jnp.float32),
        grid_spec=grid_spec,
        compiler_params=pltpu.CompilerParams(
            dimension_semantics=("parallel",),
            vmem_limit_bytes=vmem_limit,
        ),
    )(emb_table, wt_p)


# -----------------------------------------------------------------------------
# Kernel 2: EmbeddingBag(mode='mean') over the projected table + bias.
#           Processes `bags_per_step` bags per grid step.
# -----------------------------------------------------------------------------
def _bag_kernel(text_ref, offs_ref,        # scalar prefetch (SMEM)
                proj_ref, bias_ref,        # VMEM inputs (single-buffered constants)
                out_ref,                   # VMEM output (TB, C_pad)
                *, bags_per_step, c_pad):
    step = pl.program_id(0)
    bias = bias_ref[...]                                     # (1, C_pad)
    zero = jnp.zeros((1, c_pad), jnp.float32)

    rows = []
    for j in range(bags_per_step):                           # static unroll over bags
        bag = step * bags_per_step + j
        start = offs_ref[bag]
        count = offs_ref[bag + 1] - start

        # 4 independent accumulators -> the dynamic (1, C_pad) row gathers overlap
        # instead of running at load-use latency on a single acc += row chain.
        def body4(i, accs, start=start):
            a0, a1, a2, a3 = accs
            base = start + 4 * i
            a0 = a0 + proj_ref[pl.ds(text_ref[base], 1), :]
            a1 = a1 + proj_ref[pl.ds(text_ref[base + 1], 1), :]
            a2 = a2 + proj_ref[pl.ds(text_ref[base + 2], 1), :]
            a3 = a3 + proj_ref[pl.ds(text_ref[base + 3], 1), :]
            return a0, a1, a2, a3

        n4 = count // 4
        a0, a1, a2, a3 = lax.fori_loop(0, n4, body4, (zero, zero, zero, zero))
        bag_sum = (a0 + a1) + (a2 + a3)

        def body1(i, acc, start=start, n4=n4):               # 0..3 remainder tokens
            tok = text_ref[start + 4 * n4 + i]
            return acc + proj_ref[pl.ds(tok, 1), :]

        bag_sum = lax.fori_loop(0, count - 4 * n4, body1, bag_sum)

        cnt = jnp.maximum(count, 1).astype(jnp.float32)      # empty bag -> zeros (+ bias)
        rows.append(bag_sum / cnt + bias)                    # exact mean + folded Linear bias

    out_ref[...] = jnp.concatenate(rows, axis=0)             # one full (TB, 128) tile store


def text_classification_forward(text, offsets, emb_table, fc_weight, fc_bias,
                                *, bags_per_step=16, tile_v_max=1024):
    """Forward pass of TextClassificationModel.

    text:      (T,) int  flat token ids
    offsets:   (B,) int  bag start offsets (as for nn.EmbeddingBag)
    emb_table: (V, E) f32
    fc_weight: (C, E) f32  (PyTorch nn.Linear layout)
    fc_bias:   (C,)   f32
    returns:   (B, C) f32
    """
    text = text.astype(jnp.int32)
    offsets = offsets.astype(jnp.int32)
    emb_table = emb_table.astype(jnp.float32)
    fc_weight = fc_weight.astype(jnp.float32)
    fc_bias = fc_bias.astype(jnp.float32)

    num_bags = offsets.shape[0]
    total_tokens = text.shape[0]
    vocab, embed_dim = emb_table.shape
    num_class = fc_weight.shape[0]
    vmem_limit = _vmem_limit_bytes()

    # Only the (tiny) classifier weight / bias are lane-padded; emb_table is used as-is.
    c_pad = _round_up(num_class, _LANE)
    wt_p = jnp.zeros((embed_dim, c_pad), jnp.float32).at[:, :num_class].set(fc_weight.T)
    bias_p = jnp.zeros((1, c_pad), jnp.float32).at[0, :num_class].set(fc_bias)

    # mean(E[text]) @ W.T == mean((E @ W.T)[text]): project the table once in Pallas.
    tile_v = min(tile_v_max, _round_up(vocab, _SUBLANE))
    proj = _project_table(emb_table, wt_p, tile_v, vmem_limit)   # (vocab, c_pad) f32

    # Pad bag count to a multiple of bags_per_step; padding bags are empty
    # (start == end == total_tokens) and are sliced off below.
    b_pad = _round_up(num_bags, bags_per_step)
    offs_ext = jnp.concatenate([
        offsets,
        jnp.full((b_pad + 1 - num_bags,), total_tokens, jnp.int32),
    ])

    kernel = functools.partial(_bag_kernel,
                               bags_per_step=bags_per_step, c_pad=c_pad)
    grid_spec = pltpu.PrefetchScalarGridSpec(
        num_scalar_prefetch=2,                               # text, offs_ext -> SMEM
        grid=(b_pad // bags_per_step,),
        in_specs=[
            # Projected (V, C_pad) table: constant, single-buffered, VMEM-resident
            # (tiny thanks to the algebraic hoist: C_pad-wide, not E-wide).
            # TODO(synk): for very large vocab (vocab * c_pad * 4 beyond ~60-75% of VMEM)
            # keep proj HBM-resident (memory_space=pl.ANY) with manual double-buffered row
            # DMA, and chunk `text` per grid step instead of prefetching the whole stream
            # into SMEM (1-D SMEM arrays pad to next_pow2(4T) bytes).
            _maybe_single_buffered((vocab, c_pad), lambda s, text, offs: (0, 0)),
            _maybe_single_buffered((1, c_pad), lambda s, text, offs: (0, 0)),
        ],
        out_specs=pl.BlockSpec((bags_per_step, c_pad), lambda s, text, offs: (s, 0)),
    )
    out_full = pl.pallas_call(
        kernel,
        out_shape=jax.ShapeDtypeStruct((b_pad, c_pad), jnp.float32),
        grid_spec=grid_spec,
        compiler_params=pltpu.CompilerParams(
            dimension_semantics=("parallel",),               # bag tiles independent
            vmem_limit_bytes=vmem_limit,
        ),
    )(text, offs_ext, proj, bias_p)

    return out_full[:num_bags, :num_class]


def _reference_forward(text, offsets, emb_table, fc_weight, fc_bias):
    """Pure-JAX reference mirroring nn.EmbeddingBag(mode='mean') + nn.Linear."""
    total = text.shape[0]
    offs_ext = jnp.concatenate(
        [offsets.astype(jnp.int32), jnp.array([total], dtype=jnp.int32)])
    rows = emb_table[text]                                   # (T, E)
    pos = jnp.arange(total)
    outs = []
    for b in range(offsets.shape[0]):
        s, e = offs_ext[b], offs_ext[b + 1]
        mask = ((pos >= s) & (pos < e)).astype(jnp.float32)[:, None]
        cnt = jnp.maximum(e - s, 1).astype(jnp.float32)
        outs.append(jnp.sum(rows * mask, axis=0) / cnt)
    return jnp.stack(outs) @ fc_weight.T + fc_bias


if __name__ == "__main__":
    vocab_size = 64
    embed_dim = 32
    num_class = 4

    # 20 variable-length "sentences" -> 2 grid steps of 16 bags (last step 3/4 padded).
    lengths = [5, 3, 7, 4, 6, 2, 5, 8, 3, 4, 6, 5, 1, 9, 2, 7, 4, 3, 6, 5]
    total_tokens = int(np.sum(lengths))                      # 95
    offsets = jnp.asarray(np.concatenate([[0], np.cumsum(lengths)[:-1]]), jnp.int32)

    key = jax.random.PRNGKey(0)
    k_emb, k_fc, k_txt = jax.random.split(key, 3)
    initrange = 0.5
    emb_table = jax.random.uniform(k_emb, (vocab_size, embed_dim), jnp.float32,
                                   -initrange, initrange)
    fc_weight = jax.random.uniform(k_fc, (num_class, embed_dim), jnp.float32,
                                   -initrange, initrange)
    fc_bias = jnp.zeros((num_class,), jnp.float32)
    text = jax.random.randint(k_txt, (total_tokens,), 0, vocab_size, jnp.int32)

    out = text_classification_forward(text, offsets, emb_table, fc_weight, fc_bias)
    out = jax.block_until_ready(out)

    ref = _reference_forward(text, offsets, emb_table, fc_weight, fc_bias)
    # Exact mean divide (approx reciprocal removed) -> tight tolerance vs. the reference.
    np.testing.assert_allclose(np.asarray(out), np.asarray(ref), rtol=1e-4, atol=1e-5)

    print("KERNEL_OK")
</pallas_src>

<mosaic_0001>
module attributes {stable_mosaic.version = 11 : i64} {
  func.func @_project_kernel(%arg0: i32, %arg1: memref<64x32xf32, #tpu.memory_space<vmem>>, %arg2: memref<32x128xf32, #tpu.memory_space<vmem>>, %arg3: memref<64x128xf32, #tpu.memory_space<vmem>>) attributes {dimension_semantics = [#tpu.dimension_semantics<parallel>], iteration_bounds = array<i64: 1>, scalar_prefetch = 0 : i64, scratch_operands = 0 : i64, tpu.core_type = #tpu.core_type<tc>, window_params = [{transform_indices = @transform_0, window_bounds = array<i64: 64, 32>}, {pipeline_mode = #tpu.pipeline_mode<synchronous>, transform_indices = @transform_1, window_bounds = array<i64: 32, 128>}, {transform_indices = @transform_2, window_bounds = array<i64: 64, 128>}]} {
    %c0 = arith.constant 0 : index
    %c0_0 = arith.constant 0 : index
    %0 = vector.load %arg1[%c0, %c0_0] : memref<64x32xf32, #tpu.memory_space<vmem>>, vector<64x32xf32>
    %c0_1 = arith.constant 0 : index
    %c0_2 = arith.constant 0 : index
    %1 = vector.load %arg2[%c0_1, %c0_2] : memref<32x128xf32, #tpu.memory_space<vmem>>, vector<32x128xf32>
    %cst = arith.constant dense<0.000000e+00> : vector<64x128xf32>
    %2 = tpu.matmul %0, %1, %cst {dimension_numbers = #tpu.dot_dimension_numbers<[1], [0], [0], [1], [0, 0, 1, 1], [], []>} : vector<64x32xf32>, vector<32x128xf32>, vector<64x128xf32> -> vector<64x128xf32>
    %c0_3 = arith.constant 0 : index
    %c0_4 = arith.constant 0 : index
    %3 = vector.load %arg3[%c0_3, %c0_4] : memref<64x128xf32, #tpu.memory_space<vmem>>, vector<64x128xf32>
    tpu.vector_store %arg3[%c0_3, %c0_4], %2 {strides = array<i32>} : memref<64x128xf32, #tpu.memory_space<vmem>>, vector<64x128xf32>,
    return
  }
  func.func @transform_0(%arg0: i32) -> (i32, i32) {
    %c0_i32 = arith.constant 0 : i32
    %c0_i32_0 = arith.constant 0 : i32
    return %arg0, %c0_i32 : i32, i32
  }
  func.func @transform_1(%arg0: i32) -> (i32, i32) {
    %c0_i32 = arith.constant 0 : i32
    %c0_i32_0 = arith.constant 0 : i32
    %c0_i32_1 = arith.constant 0 : i32
    return %c0_i32, %c0_i32_0 : i32, i32
  }
  func.func @transform_2(%arg0: i32) -> (i32, i32) {
    %c0_i32 = arith.constant 0 : i32
    %c0_i32_0 = arith.constant 0 : i32
    return %arg0, %c0_i32 : i32, i32
  }
}

</mosaic_0001>

<bundles_post_ra>
// kernel: tpu_custom_call.1
= control target key start
LH: loop header
LB: loop body
LE: loop exit
PB: predicated region body
PF: predicated region fallthrough
CT: control target
= control target key end

     0   :  { %vm24_vm0 = vcmask 261120   ;;  %s331_s0 = inlined_call_operand.vmem [shape: f32[64,32], index: 0, kind: input, shape index: {}]   ;;  %s332_s1 = inlined_call_operand.vmem [shape: f32[32,128], index: 1, kind: input, shape index: {}]   ;;  %s333_s2 = inlined_call_operand.hbm [shape: f32[64,128], index: 2, kind: output, shape index: {}]  }
   0x1   :  { %v20_v0 = vld [vmem:[%s332_s1] sm:$0xff]  ;;  %v21_v1 = vld [vmem:[%s332_s1 + $0x8] sm:$0xff]  ;;  %v22_v2 = vld [vmem:[%s332_s1 + $0x10] sm:$0xff] }
   0x2   :  { %v218_v3 = vpack.c.bf16 %v21_v1, %v20_v0  ;;  %v23_v4 = vld [vmem:[%s332_s1 + $0x18] sm:$0xff]  ;;  %v12_v5 = vld [vmem:[%s331_s0] sm:$0xff] }
   0x3   :  { %v16_v6 = vld [vmem:[%s331_s0 + $0x20] sm:$0xff]  ;;  %v222_v7 = vpack.c.bf16 %v23_v4, %v22_v2  ;;  %206 = vmatprep.mubr.msk.f32.mxu0 %vm24_vm0, %v12_v5 }
   0x4   :  { %212 = vmatprep.mubr.msk.f32.mxu1 %vm24_vm0, %v16_v6  ;;  %219 = vmatprep.subr.bf16.mxu0 %v218_v3 }
   0x5   :  { %226 = vmatprep.subr.bf16.mxu1 %v218_v3  ;;  %221 = vmatpush3.bf16.msra.mxu0 %v218_v3 }
   0x6   :  { %228 = vmatpush3.bf16.msra.mxu1 %v218_v3 }
   0x7   :  { %7 = vsyncpa [#allocation3], 0  ;;  %223 = vmatprep.subr.bf16.mxu0 %v222_v7  ;;  %227 = vmatprep.subr.bf16.mxu1 %v222_v7  ;;  %v13_v8 = vld [vmem:[%s331_s0 + $0x8] sm:$0xff]  ;;  %v14_v10 = vld [vmem:[%s331_s0 + $0x10] sm:$0xff]  ;;  %s257_s4 = smov [#allocation2]  }
   0x8   :  { %v17_v9 = vld [vmem:[%s331_s0 + $0x28] sm:$0xff]  ;;  %v18_v11 = vld [vmem:[%s331_s0 + $0x30] sm:$0xff]  ;;  %v15_v12 = vld [vmem:[%s331_s0 + $0x18] sm:$0xff]  ;;  %s167_s5 = sshll.u32 %s257_s4, 4  ;;  %s168_s5 = int_to_ptr.vmem [resolvable:$true] %s167_s5 }
   0x9   :  { %225 = vmatpush3.bf16.msra.mxu0 %v222_v7  ;;  %v19_v13 = vld [vmem:[%s331_s0 + $0x38] sm:$0xff]  ;;  %s233_s0 = scalar_lea.vmem %s168_s5, 1024  ;;  %p238_p1 = scmp.lt.s32.totalorder %s168_s5, %s168_s5 }
   0xa   :  { %229 = vmatpush3.bf16.msra.mxu1 %v222_v7  ;;  %p234_p0 = scmp.ne.s32.totalorder %s168_s5, %s233_s0  ;;  %p239_p2 = scmp.lt.s32.totalorder %s233_s0, %s233_s0 }
   0xc   :  { %207 = vmatmul.mubr.msk.f32.vlgmr.msra.gmra.mrb[0].mxu0 %vm24_vm0, %v13_v8  ;;  %p240_p3 = por %p239_p2, %p238_p1 }
   0xd   :  { %213 = vmatmul.mubr.msk.f32.vlgmr.msra.gmra.mrb[0].mxu1 %vm24_vm0, %v17_v9  ;;  %209 = vmatprep.mubr.msk.f32.mxu0 %vm24_vm0, %v14_v10 }
   0xe   :  { %215 = vmatprep.mubr.msk.f32.mxu1 %vm24_vm0, %v18_v11  ;;  %p241_p4 = pnand %p240_p3, %p234_p0 }
  0x10   :  { %210 = vmatmul.mubr.msk.f32.gmra.mrb[2].mxu0 %vm24_vm0, %v15_v12 }
  0x11   :  { %216 = vmatmul.mubr.msk.f32.gmra.mrb[2].mxu1 %vm24_vm0, %v19_v13 }
  0xdf   :  { %v208_v14 = vpop.f32.mrb[0].mxu0 }
  0xe0   :  { %v214_v15 = vpop.f32.mrb[0].mxu1  ;;  %155 = vst [vmem:[#allocation2 + $0x8] sm:$0xff] %v208_v14  ;;  %v115_v16 = vpop.f32.mrb[1].mxu0 }
  0xe1   :  { %159 = vst [vmem:[#allocation2 + $0x28] sm:$0xff] %v214_v15  ;;  %v135_v17 = vpop.f32.mrb[1].mxu1  ;;  %154 = vst [vmem:[#allocation2] sm:$0xff] %v115_v16 }
  0xe2   :  { %158 = vst [vmem:[#allocation2 + $0x20] sm:$0xff] %v135_v17 }
  0xe3   :  { %v211_v18 = vpop.f32.mrb[2].mxu0 }
  0xe4   :  { %v217_v19 = vpop.f32.mrb[2].mxu1  ;;  %157 = vst [vmem:[#allocation2 + $0x18] sm:$0xff] %v211_v18  ;;  %v125_v20 = vpop.f32.mrb[3].mxu0 }
  0xe5   :  { %161 = vst [vmem:[#allocation2 + $0x38] sm:$0xff] %v217_v19  ;;  %v145_v21 = vpop.f32.mrb[3].mxu1  ;;  %156 = vst [vmem:[#allocation2 + $0x10] sm:$0xff] %v125_v20 }
  0xe6   :  { %160 = vst [vmem:[#allocation2 + $0x30] sm:$0xff] %v145_v21 }
  0xe7   :  { %244 = shalt.err (!%p241_p4)
}
  0xe8   :  { %s245_s8 = scalar_lea.hbm %s333_s2, 1024 }
  0xe9   :  { %p246_p5 = scmp.ne.s32.totalorder %s333_s2, %s245_s8  ;;  %p249_p6 = scmp.lt.u32.totalorder %s245_s8, %s333_s2 }
  0xeb   :  { %p251_p7 = pnand %p249_p6, %p246_p5 }
  0xed   :  { %254 = shalt.err (!%p251_p7)
}
  0xee   :  { %s258_s13 = smov 128   ;;  %s259_s14 = smov 8  }
  0xef   :  { %173 = dma.vmem_to_hbm [thread:$0]  %s168_s5, 1024, %s333_s2, [#allocation3], %s258_s13, %s258_s13, %s259_s14  }
  0xf0   :  { %255 = dma.done.wait [#allocation3], 1024  }
  0xf1   :  { %256 = vsyncadd [#allocation3], 4294966272 }
  0xf2   :  { %177 = vsyncpa [#allocation3], 1 }

</bundles_post_ra>
